<compile_context>
chip_gen: v7x
topology: tpu7x:2x2x1
jax: 0.10.0
libtpu: 0.0.40
codegen_flags: <defaults>
</compile_context>

<pallas_src>
import functools

import jax
import jax.numpy as jnp
from jax.experimental import pallas as pl
from jax.experimental.pallas import tpu as pltpu


def _conv_bn_relu_kernel(a_ref, w_ref, bias_ref, o_ref):
    # a_ref:    (TM, Kp)   bf16 im2col patch rows
    # w_ref:    (Kp, OCp)  bf16 conv weight with BN scale folded in
    # bias_ref: (1, OCp)   f32 folded BN bias
    # o_ref:    (TM, OCp)  f32 output tile
    acc = jnp.dot(a_ref[...], w_ref[...], preferred_element_type=jnp.float32)
    o_ref[...] = jnp.maximum(acc + bias_ref[...], 0.0).astype(o_ref.dtype)


def _round_up(x, m):
    return (x + m - 1) // m * m


def _im2col(x, kh, kw, stride, padding):
    # x: (N, C, H, W) -> (N*OH*OW, C*KH*KW), feature order (C, KH, KW) to match
    # PyTorch weight.reshape(OC, C*KH*KW).
    n, c, h, w = x.shape
    xp = jnp.pad(x, ((0, 0), (0, 0), (padding, padding), (padding, padding)))
    oh = (h + 2 * padding - kh) // stride + 1
    ow = (w + 2 * padding - kw) // stride + 1
    cols = []
    for i in range(kh):
        for j in range(kw):
            cols.append(
                xp[:, :, i : i + (oh - 1) * stride + 1 : stride,
                         j : j + (ow - 1) * stride + 1 : stride]
            )  # (N, C, OH, OW)
    cols = jnp.stack(cols, axis=2)               # (N, C, KH*KW, OH, OW)
    cols = cols.reshape(n, c * kh * kw, oh, ow)  # (N, C*KH*KW, OH, OW)
    a = cols.transpose(0, 2, 3, 1).reshape(n * oh * ow, c * kh * kw)
    return a, oh, ow


@functools.partial(jax.jit, static_argnames=("stride", "padding"))
def conv_bn_relu(x, weight, gamma, beta, running_mean, running_var,
                 *, stride=1, padding=1, eps=1e-5):
    """x: (N, C, H, W) float32; weight: (OC, C, KH, KW). Returns (N, OC, OH, OW)."""
    n, c, h, w = x.shape
    oc, _, kh, kw = weight.shape

    a, oh, ow = _im2col(x, kh, kw, stride, padding)           # (M, K) f32
    m, k = a.shape

    # Fold BatchNorm (eval mode): scale goes into the weight, bias stays for
    # the in-kernel epilogue.
    scale = gamma / jnp.sqrt(running_var + eps)                # (OC,)
    bias = beta - running_mean * scale                         # (OC,)
    w_mat = weight.reshape(oc, c * kh * kw).T * scale[None, :]  # (K, OC) f32

    # Pad K for bf16 sublane alignment and OC up to a full 128-lane multiple
    # (lane-dense output => unmasked stores, dense MXU result tiles).
    k_pad = _round_up(k, 16)
    oc_pad = _round_up(oc, 128)

    a = jnp.pad(a, ((0, 0), (0, k_pad - k))).astype(jnp.bfloat16)
    w_mat = jnp.pad(w_mat, ((0, k_pad - k), (0, oc_pad - oc))).astype(jnp.bfloat16)
    bias = jnp.pad(bias, (0, oc_pad - oc)).reshape(1, oc_pad).astype(jnp.float32)

    # ---- M-tile selection against a VMEM budget (conservative for v7x) ----
    vmem_budget = 24 * 1024 * 1024
    per_row = 2 * (k_pad * 2) + 2 * (oc_pad * 4)        # dbl-buffered A (bf16) + out (f32)
    resident = 2 * (k_pad * oc_pad * 2) + oc_pad * 4    # weight (bf16) + bias (f32)
    tm_cap = max(128, ((vmem_budget - resident) // per_row) // 128 * 128)
    m_128 = _round_up(m, 128)
    tm = min(1024, tm_cap, m_128)
    # Keep >= 2 grid steps when M allows, so the parallel M axis can shard
    # across v7x's 2 TensorCores instead of leaving half the chip idle.
    if m_128 // tm < 2 and m_128 >= 256:
        tm = max(128, (m_128 // 2) // 128 * 128)

    m_pad = _round_up(m, tm)
    if m_pad != m:
        a = jnp.pad(a, ((0, m_pad - m), (0, 0)))

    vmem_used = per_row * tm + resident
    vmem_limit = int(min(max(2 * vmem_used, 8 << 20), 32 << 20))

    out = pl.pallas_call(
        _conv_bn_relu_kernel,
        out_shape=jax.ShapeDtypeStruct((m_pad, oc_pad), jnp.float32),
        grid_spec=pltpu.PrefetchScalarGridSpec(
            num_scalar_prefetch=0,
            grid=(m_pad // tm,),
            in_specs=[
                pl.BlockSpec((tm, k_pad), lambda i: (i, 0)),
                pl.BlockSpec((k_pad, oc_pad), lambda i: (0, 0)),
                pl.BlockSpec((1, oc_pad), lambda i: (0, 0)),
            ],
            out_specs=pl.BlockSpec((tm, oc_pad), lambda i: (i, 0)),
        ),
        compiler_params=pltpu.CompilerParams(
            dimension_semantics=("parallel",),
            vmem_limit_bytes=vmem_limit),
    )(a, w_mat, bias)

    out = out[:m, :oc]                                        # drop M/OC padding
    out = out.reshape(n, oh, ow, oc).transpose(0, 3, 1, 2)    # back to NCHW
    return out


def _reference(x, weight, gamma, beta, running_mean, running_var,
               stride, padding, eps=1e-5):
    y = jax.lax.conv_general_dilated(
        x, weight, window_strides=(stride, stride),
        padding=((padding, padding), (padding, padding)),
        dimension_numbers=("NCHW", "OIHW", "NCHW"))
    scale = gamma / jnp.sqrt(running_var + eps)
    bias = beta - running_mean * scale
    y = y * scale[None, :, None, None] + bias[None, :, None, None]
    return jnp.maximum(y, 0.0)


if __name__ == "__main__":
    # ConvBNReLU(in_channels=4, out_channels=8, kernel_size=3, stride=1, padding=1)
    N, C, H, W = 2, 4, 16, 16
    OC, KH, KW = 8, 3, 3
    stride, padding = 1, 1

    key = jax.random.PRNGKey(0)
    kx, kw_, kg, kb, km, kv = jax.random.split(key, 6)
    x = jax.random.normal(kx, (N, C, H, W), dtype=jnp.float32)
    weight = jax.random.normal(kw_, (OC, C, KH, KW), dtype=jnp.float32) * 0.1
    gamma = jax.random.uniform(kg, (OC,), dtype=jnp.float32, minval=0.5, maxval=1.5)
    beta = jax.random.normal(kb, (OC,), dtype=jnp.float32) * 0.1
    running_mean = jax.random.normal(km, (OC,), dtype=jnp.float32) * 0.1
    running_var = jax.random.uniform(kv, (OC,), dtype=jnp.float32,
                                     minval=0.5, maxval=1.5)

    out = conv_bn_relu(x, weight, gamma, beta, running_mean, running_var,
                       stride=stride, padding=padding)
    out = jax.block_until_ready(out)

    ref = _reference(x, weight, gamma, beta, running_mean, running_var,
                     stride, padding)
    assert out.shape == (N, OC, H, W), out.shape
    # bf16 operands / f32 accumulation: tolerance relaxed accordingly.
    assert jnp.allclose(out, ref, atol=2e-2, rtol=2e-2), \
        float(jnp.max(jnp.abs(out - ref)))

    print("KERNEL_OK")
</pallas_src>

<mosaic_0001>
module attributes {stable_mosaic.version = 11 : i64} {
  func.func @_conv_bn_relu_kernel(%arg0: i32, %arg1: memref<256x48xbf16, #tpu.memory_space<vmem>>, %arg2: memref<48x128xbf16, #tpu.memory_space<vmem>>, %arg3: memref<1x128xf32, #tpu.memory_space<vmem>>, %arg4: memref<256x128xf32, #tpu.memory_space<vmem>>) attributes {dimension_semantics = [#tpu.dimension_semantics<parallel>], iteration_bounds = array<i64: 2>, scalar_prefetch = 0 : i64, scratch_operands = 0 : i64, tpu.core_type = #tpu.core_type<tc>, window_params = [{transform_indices = @transform_0, window_bounds = array<i64: 256, 48>}, {pipeline_mode = #tpu.pipeline_mode<synchronous>, transform_indices = @transform_1, window_bounds = array<i64: 48, 128>}, {pipeline_mode = #tpu.pipeline_mode<synchronous>, transform_indices = @transform_2, window_bounds = array<i64: 1, 128>}, {transform_indices = @transform_3, window_bounds = array<i64: 256, 128>}]} {
    %c0 = arith.constant 0 : index
    %c0_0 = arith.constant 0 : index
    %0 = vector.load %arg1[%c0, %c0_0] : memref<256x48xbf16, #tpu.memory_space<vmem>>, vector<256x48xbf16>
    %c0_1 = arith.constant 0 : index
    %c0_2 = arith.constant 0 : index
    %1 = vector.load %arg2[%c0_1, %c0_2] : memref<48x128xbf16, #tpu.memory_space<vmem>>, vector<48x128xbf16>
    %cst = arith.constant dense<0.000000e+00> : vector<256x128xf32>
    %2 = tpu.matmul %0, %1, %cst {dimension_numbers = #tpu.dot_dimension_numbers<[1], [0], [0], [1], [0, 0, 1, 1], [], []>} : vector<256x48xbf16>, vector<48x128xbf16>, vector<256x128xf32> -> vector<256x128xf32>
    %c0_3 = arith.constant 0 : index
    %c0_4 = arith.constant 0 : index
    %3 = vector.load %arg3[%c0_3, %c0_4] : memref<1x128xf32, #tpu.memory_space<vmem>>, vector<1x128xf32>
    %4 = vector.broadcast %3 : vector<1x128xf32> to vector<256x128xf32>
    %5 = arith.addf %2, %4 : vector<256x128xf32>
    %cst_5 = arith.constant 0.000000e+00 : f32
    %6 = vector.broadcast %cst_5 : f32 to vector<256x128xf32>
    %7 = arith.maximumf %5, %6 : vector<256x128xf32>
    %c0_6 = arith.constant 0 : index
    %c0_7 = arith.constant 0 : index
    %8 = vector.load %arg4[%c0_6, %c0_7] : memref<256x128xf32, #tpu.memory_space<vmem>>, vector<256x128xf32>
    tpu.vector_store %arg4[%c0_6, %c0_7], %7 {strides = array<i32>} : memref<256x128xf32, #tpu.memory_space<vmem>>, vector<256x128xf32>,
    return
  }
  func.func @transform_0(%arg0: i32) -> (i32, i32) {
    %c0_i32 = arith.constant 0 : i32
    %c0_i32_0 = arith.constant 0 : i32
    return %arg0, %c0_i32 : i32, i32
  }
  func.func @transform_1(%arg0: i32) -> (i32, i32) {
    %c0_i32 = arith.constant 0 : i32
    %c0_i32_0 = arith.constant 0 : i32
    %c0_i32_1 = arith.constant 0 : i32
    return %c0_i32, %c0_i32_0 : i32, i32
  }
  func.func @transform_2(%arg0: i32) -> (i32, i32) {
    %c0_i32 = arith.constant 0 : i32
    %c0_i32_0 = arith.constant 0 : i32
    %c0_i32_1 = arith.constant 0 : i32
    return %c0_i32, %c0_i32_0 : i32, i32
  }
  func.func @transform_3(%arg0: i32) -> (i32, i32) {
    %c0_i32 = arith.constant 0 : i32
    %c0_i32_0 = arith.constant 0 : i32
    return %arg0, %c0_i32 : i32, i32
  }
}

</mosaic_0001>

<bundles_post_ra>
// kernel: conv_bn_relu.1
= control target key start
LH: loop header
LB: loop body
LE: loop exit
PB: predicated region body
PF: predicated region fallthrough
CT: control target
= control target key end

     0   :  { %s813_s12 = smov 0   ;;  %s948_s0 = inlined_call_operand.vmem [shape: bf16[512,48], index: 0, kind: input, shape index: {}]   ;;  %s949_s1 = inlined_call_operand.vmem [shape: bf16[48,128], index: 1, kind: input, shape index: {}]   ;;  %s950_s2 = inlined_call_operand.vmem [shape: f32[1,128], index: 2, kind: input, shape index: {}]   ;;  %s951_s3 = inlined_call_operand.vmem [shape: f32[512,128], index: 3, kind: output, shape index: {}]  }
   0x1 LB: > { %s648_s13 = sadd.s32 4294967295, %s791_s12   ;;  %p652_p0 = scmp.ge.s32.totalorder %s791_s12, 1  ;;  %s791_s12 = sphi %s813_s12, %s13_s12  }
   0x2   : > { %p138_p1 = scmp.lt.s32.totalorder %s791_s12, 3 }
   0x4   : > { %p139_p2 = pnand %p652_p0, %p138_p1 }
   0x5   : > { %v766_v0 = vld [vmem:[%s949_s1] sm:$0xff] (!%p139_p2)   ;;  %s653_s16 = sshll.u32 (!%p139_p2), %s648_s13, 5  ;;  %v767_v1 = vld [vmem:[%s949_s1 + $0x8] sm:$0xff] (!%p139_p2)   ;;  %v768_v2 = vld [vmem:[%s949_s1 + $0x10] sm:$0xff] (!%p139_p2)   ;;  %vm318_vm0 = vcmask (!%p139_p2), 392192  }
   0x6   : > { %142 = sbr.rel (%p139_p2) target bundleno = 263 (0x107), region = 32  ;;  %p163_p3 = scmp.lt.s32.totalorder (!%p139_p2), %s653_s16, 63  ;;  %714 = vmatprep.subr.bf16.mxu0 (!%p139_p2), %v766_v0  ;;  %752 = vmatprep.subr.bf16.mxu1 (!%p139_p2), %v766_v0  ;;  %v873_v19 = vld [vmem:[%s950_s2] ss:$0 sm:$0xff] (!%p139_p2) }
   0x7   : > { %715 = vmatpush3.bf16.msra.mxu0 (!%p139_p2), %v766_v0  ;;  %755 = vmatpush3.bf16.msra.mxu1 (!%p139_p2), %v766_v0 }
   0x8   : > { %716 = vmatprep.subr.bf16.mxu0 (!%p139_p2), %v767_v1  ;;  %753 = vmatprep.subr.bf16.mxu1 (!%p139_p2), %v767_v1 }
   0xb   : > { %717 = vmatpush3.bf16.msra.mxu0 (!%p139_p2), %v767_v1  ;;  %756 = vmatpush3.bf16.msra.mxu1 (!%p139_p2), %v767_v1 }
   0xc   : > { %718 = vmatprep.subr.bf16.mxu0 (!%p139_p2), %v768_v2  ;;  %754 = vmatprep.subr.bf16.mxu1 (!%p139_p2), %v768_v2 }
   0xd   : > { %s953_s16 = smov (!%p163_p3, %s653_s16), 63 }
   0xe   : > { %s654_s21 = sshll.u32 %s953_s16, 2  ;;  %s656_s27 = sshll.u32 %s953_s16, 3 }
   0xf   : > { %s836_s24 = scalar_lea.vmem %s948_s0, %s654_s21  ;;  %719 = vmatpush3.bf16.msra.mxu0 %v768_v2  ;;  %757 = vmatpush3.bf16.msra.mxu1 %v768_v2  ;;  %s881_s30 = scalar_lea.vmem %s951_s3, %s656_s27 }
  0x10   : > { %v769_v3 = vld [vmem:[%s836_s24] sm:$0xff]   ;;  %v771_v5 = vld [vmem:[%s836_s24 + $0x8] sm:$0xff]   ;;  %v773_v7 = vld [vmem:[%s836_s24 + $0x10] sm:$0xff]  }
  0x11   : > { %v770_v4 = vld [vmem:[%s836_s24 + $0x40] sm:$0xff]   ;;  %720 = vmatprep.mubr.msk.bf16.mxu0 %vm318_vm0, %v769_v3  ;;  %v772_v6 = vld [vmem:[%s836_s24 + $0x48] sm:$0xff]   ;;  %v774_v8 = vld [vmem:[%s836_s24 + $0x50] sm:$0xff]  }
  0x12   : > { %736 = vmatprep.mubr.msk.bf16.mxu1 %vm318_vm0, %v770_v4  ;;  %721 = vmatmul.mubr.msk.bf16.vlgmr.msra.gmra.mrb[0].mxu0 %vm318_vm0, %v771_v5  ;;  %v775_v9 = vld [vmem:[%s836_s24 + $0x18] sm:$0xff]   ;;  %v777_v11 = vld [vmem:[%s836_s24 + $0x20] sm:$0xff]   ;;  %v779_v13 = vld [vmem:[%s836_s24 + $0x28] sm:$0xff]  }
  0x13   : > { %737 = vmatmul.mubr.msk.bf16.vlgmr.msra.gmra.mrb[0].mxu1 %vm318_vm0, %v772_v6  ;;  %724 = vmatprep.mubr.msk.bf16.mxu0 %vm318_vm0, %v773_v7  ;;  %v776_v10 = vld [vmem:[%s836_s24 + $0x58] sm:$0xff]   ;;  %v778_v12 = vld [vmem:[%s836_s24 + $0x60] sm:$0xff]   ;;  %v780_v14 = vld [vmem:[%s836_s24 + $0x68] sm:$0xff]  }
  0x14   : > { %740 = vmatprep.mubr.msk.bf16.mxu1 %vm318_vm0, %v774_v8  ;;  %v781_v15 = vld [vmem:[%s836_s24 + $0x30] sm:$0xff]   ;;  %v783_v17 = vld [vmem:[%s836_s24 + $0x38] sm:$0xff]  }
  0x15   : > { %v782_v16 = vld [vmem:[%s836_s24 + $0x70] sm:$0xff]   ;;  %v784_v18 = vld [vmem:[%s836_s24 + $0x78] sm:$0xff]  }
  0x1a   : > { %725 = vmatmul.mubr.msk.bf16.gmra.mrb[4].mxu0 %vm318_vm0, %v775_v9 }
  0x1b   : > { %741 = vmatmul.mubr.msk.bf16.gmra.mrb[4].mxu1 %vm318_vm0, %v776_v10  ;;  %728 = vmatprep.mubr.msk.bf16.mxu0 %vm318_vm0, %v777_v11 }
  0x1c   : > { %744 = vmatprep.mubr.msk.bf16.mxu1 %vm318_vm0, %v778_v12 }
  0x22   : > { %729 = vmatmul.mubr.msk.bf16.gmra.mrb[8].mxu0 %vm318_vm0, %v779_v13 }
  0x23   : > { %745 = vmatmul.mubr.msk.bf16.gmra.mrb[8].mxu1 %vm318_vm0, %v780_v14  ;;  %732 = vmatprep.mubr.msk.bf16.mxu0 %vm318_vm0, %v781_v15 }
  0x24   : > { %748 = vmatprep.mubr.msk.bf16.mxu1 %vm318_vm0, %v782_v16 }
  0x2a   : > { %733 = vmatmul.mubr.msk.bf16.gmra.mrb[12].mxu0 %vm318_vm0, %v783_v17 }
  0x2b   : > { %749 = vmatmul.mubr.msk.bf16.gmra.mrb[12].mxu1 %vm318_vm0, %v784_v18 }
  0xe5   : > { %v722_v20 = vpop.f32.mrb[0].mxu0 }
  0xe6   : > { %v738_v21 = vpop.f32.mrb[0].mxu1  ;;  %v410_v22 = vadd.f32 %v722_v20, %v873_v19  ;;  %v401_v24 = vpop.f32.mrb[1].mxu0 }
  0xe7   : > { %v474_v23 = vadd.f32 %v738_v21, %v873_v19  ;;  %v465_v25 = vpop.f32.mrb[1].mxu1  ;;  %v402_v26 = vadd.f32 %v873_v19, %v401_v24  ;;  %v723_v28 = vpop.f32.mrb[2].mxu0 }
  0xe8   : > { %v466_v27 = vadd.f32 %v873_v19, %v465_v25  ;;  %v739_v29 = vpop.f32.mrb[2].mxu1  ;;  %v530_v30 = vmax.f32 %v410_v22, 0.0  ;;  %v413_v32 = vadd.f32 %v723_v28, %v873_v19  ;;  %v404_v34 = vpop.f32.mrb[3].mxu0 }
  0xe9   : > { %v546_v31 = vmax.f32 %v474_v23, 0.0  ;;  %v477_v33 = vadd.f32 %v739_v29, %v873_v19  ;;  %v468_v35 = vpop.f32.mrb[3].mxu1  ;;  %v528_v36 = vmax.f32 %v402_v26, 0.0  ;;  %v405_v38 = vadd.f32 %v873_v19, %v404_v34 }
  0xea   : > { %v544_v37 = vmax.f32 %v466_v27, 0.0  ;;  %v469_v39 = vadd.f32 %v873_v19, %v468_v35  ;;  %562 = vst [vmem:[%s881_s30 + $0x10] sm:$0xff] %v530_v30  ;;  %v531_v40 = vmax.f32 %v413_v32, 0.0 }
  0xeb   : > { %578 = vst [vmem:[%s881_s30 + $0x90] sm:$0xff] %v546_v31  ;;  %v547_v41 = vmax.f32 %v477_v33, 0.0  ;;  %560 = vst [vmem:[%s881_s30] sm:$0xff] %v528_v36  ;;  %v529_v42 = vmax.f32 %v405_v38, 0.0 }
  0xec   : > { %576 = vst [vmem:[%s881_s30 + $0x80] sm:$0xff] %v544_v37  ;;  %v545_v43 = vmax.f32 %v469_v39, 0.0  ;;  %563 = vst [vmem:[%s881_s30 + $0x18] sm:$0xff] %v531_v40 }
  0xed   : > { %579 = vst [vmem:[%s881_s30 + $0x98] sm:$0xff] %v547_v41  ;;  %561 = vst [vmem:[%s881_s30 + $0x8] sm:$0xff] %v529_v42  ;;  %v726_v44 = vpop.f32.mrb[4].mxu0 }
  0xee   : > { %577 = vst [vmem:[%s881_s30 + $0x88] sm:$0xff] %v545_v43  ;;  %v742_v45 = vpop.f32.mrb[4].mxu1  ;;  %v426_v46 = vadd.f32 %v726_v44, %v873_v19  ;;  %v417_v48 = vpop.f32.mrb[5].mxu0 }
  0xef   : > { %v490_v47 = vadd.f32 %v742_v45, %v873_v19  ;;  %v481_v49 = vpop.f32.mrb[5].mxu1  ;;  %v418_v50 = vadd.f32 %v873_v19, %v417_v48  ;;  %v727_v52 = vpop.f32.mrb[6].mxu0 }
  0xf0   : > { %v482_v51 = vadd.f32 %v873_v19, %v481_v49  ;;  %v743_v53 = vpop.f32.mrb[6].mxu1  ;;  %v534_v54 = vmax.f32 %v426_v46, 0.0  ;;  %v429_v56 = vadd.f32 %v727_v52, %v873_v19  ;;  %v420_v58 = vpop.f32.mrb[7].mxu0 }
  0xf1   : > { %v550_v55 = vmax.f32 %v490_v47, 0.0  ;;  %v493_v57 = vadd.f32 %v743_v53, %v873_v19  ;;  %v484_v59 = vpop.f32.mrb[7].mxu1  ;;  %v532_v60 = vmax.f32 %v418_v50, 0.0  ;;  %v421_v62 = vadd.f32 %v873_v19, %v420_v58 }
  0xf2   : > { %v548_v61 = vmax.f32 %v482_v51, 0.0  ;;  %v485_v63 = vadd.f32 %v873_v19, %v484_v59  ;;  %566 = vst [vmem:[%s881_s30 + $0x30] sm:$0xff] %v534_v54  ;;  %v535_v0 = vmax.f32 %v429_v56, 0.0 }
  0xf3   : > { %582 = vst [vmem:[%s881_s30 + $0xb0] sm:$0xff] %v550_v55  ;;  %v551_v1 = vmax.f32 %v493_v57, 0.0  ;;  %564 = vst [vmem:[%s881_s30 + $0x20] sm:$0xff] %v532_v60  ;;  %v533_v2 = vmax.f32 %v421_v62, 0.0 }
  0xf4   : > { %580 = vst [vmem:[%s881_s30 + $0xa0] sm:$0xff] %v548_v61  ;;  %v549_v3 = vmax.f32 %v485_v63, 0.0  ;;  %567 = vst [vmem:[%s881_s30 + $0x38] sm:$0xff] %v535_v0 }
  0xf5   : > { %583 = vst [vmem:[%s881_s30 + $0xb8] sm:$0xff] %v551_v1  ;;  %565 = vst [vmem:[%s881_s30 + $0x28] sm:$0xff] %v533_v2  ;;  %v730_v4 = vpop.f32.mrb[8].mxu0 }
  0xf6   : > { %581 = vst [vmem:[%s881_s30 + $0xa8] sm:$0xff] %v549_v3  ;;  %v746_v5 = vpop.f32.mrb[8].mxu1  ;;  %v442_v6 = vadd.f32 %v730_v4, %v873_v19  ;;  %v433_v8 = vpop.f32.mrb[9].mxu0 }
  0xf7   : > { %v506_v7 = vadd.f32 %v746_v5, %v873_v19  ;;  %v497_v9 = vpop.f32.mrb[9].mxu1  ;;  %v434_v10 = vadd.f32 %v873_v19, %v433_v8  ;;  %v731_v12 = vpop.f32.mrb[10].mxu0 }
  0xf8   : > { %v498_v11 = vadd.f32 %v873_v19, %v497_v9  ;;  %v747_v13 = vpop.f32.mrb[10].mxu1  ;;  %v538_v14 = vmax.f32 %v442_v6, 0.0  ;;  %v445_v16 = vadd.f32 %v731_v12, %v873_v19  ;;  %v436_v18 = vpop.f32.mrb[11].mxu0 }
  0xf9   : > { %v554_v15 = vmax.f32 %v506_v7, 0.0  ;;  %v509_v17 = vadd.f32 %v747_v13, %v873_v19  ;;  %v500_v20 = vpop.f32.mrb[11].mxu1  ;;  %v536_v21 = vmax.f32 %v434_v10, 0.0  ;;  %v437_v23 = vadd.f32 %v873_v19, %v436_v18 }
  0xfa   : > { %v552_v22 = vmax.f32 %v498_v11, 0.0  ;;  %v501_v24 = vadd.f32 %v873_v19, %v500_v20  ;;  %570 = vst [vmem:[%s881_s30 + $0x50] sm:$0xff] %v538_v14  ;;  %v539_v25 = vmax.f32 %v445_v16, 0.0 }
  0xfb   : > { %586 = vst [vmem:[%s881_s30 + $0xd0] sm:$0xff] %v554_v15  ;;  %v555_v26 = vmax.f32 %v509_v17, 0.0  ;;  %568 = vst [vmem:[%s881_s30 + $0x40] sm:$0xff] %v536_v21  ;;  %v537_v27 = vmax.f32 %v437_v23, 0.0 }
  0xfc   : > { %584 = vst [vmem:[%s881_s30 + $0xc0] sm:$0xff] %v552_v22  ;;  %v553_v28 = vmax.f32 %v501_v24, 0.0  ;;  %571 = vst [vmem:[%s881_s30 + $0x58] sm:$0xff] %v539_v25 }
  0xfd   : > { %587 = vst [vmem:[%s881_s30 + $0xd8] sm:$0xff] %v555_v26  ;;  %569 = vst [vmem:[%s881_s30 + $0x48] sm:$0xff] %v537_v27  ;;  %v734_v29 = vpop.f32.mrb[12].mxu0 }
  0xfe   : > { %585 = vst [vmem:[%s881_s30 + $0xc8] sm:$0xff] %v553_v28  ;;  %v750_v30 = vpop.f32.mrb[12].mxu1  ;;  %v458_v31 = vadd.f32 %v734_v29, %v873_v19  ;;  %v449_v33 = vpop.f32.mrb[13].mxu0 }
  0xff   : > { %v522_v32 = vadd.f32 %v750_v30, %v873_v19  ;;  %v513_v34 = vpop.f32.mrb[13].mxu1  ;;  %v450_v35 = vadd.f32 %v873_v19, %v449_v33  ;;  %v735_v37 = vpop.f32.mrb[14].mxu0 }
 0x100   : > { %v514_v36 = vadd.f32 %v873_v19, %v513_v34  ;;  %v751_v38 = vpop.f32.mrb[14].mxu1  ;;  %v542_v39 = vmax.f32 %v458_v31, 0.0  ;;  %v461_v41 = vadd.f32 %v735_v37, %v873_v19  ;;  %v452_v43 = vpop.f32.mrb[15].mxu0 }
 0x101   : > { %v558_v40 = vmax.f32 %v522_v32, 0.0  ;;  %v525_v42 = vadd.f32 %v751_v38, %v873_v19  ;;  %v516_v44 = vpop.f32.mrb[15].mxu1  ;;  %v540_v45 = vmax.f32 %v450_v35, 0.0  ;;  %v453_v47 = vadd.f32 %v873_v19, %v452_v43 }
 0x102   : > { %v556_v46 = vmax.f32 %v514_v36, 0.0  ;;  %v517_v48 = vadd.f32 %v873_v19, %v516_v44  ;;  %574 = vst [vmem:[%s881_s30 + $0x70] sm:$0xff] %v542_v39  ;;  %v543_v49 = vmax.f32 %v461_v41, 0.0 }
 0x103   : > { %590 = vst [vmem:[%s881_s30 + $0xf0] sm:$0xff] %v558_v40  ;;  %v559_v50 = vmax.f32 %v525_v42, 0.0  ;;  %572 = vst [vmem:[%s881_s30 + $0x60] sm:$0xff] %v540_v45  ;;  %v541_v51 = vmax.f32 %v453_v47, 0.0 }
 0x104   : > { %588 = vst [vmem:[%s881_s30 + $0xe0] sm:$0xff] %v556_v46  ;;  %v557_v52 = vmax.f32 %v517_v48, 0.0  ;;  %575 = vst [vmem:[%s881_s30 + $0x78] sm:$0xff] %v543_v49 }
 0x105   : > { %591 = vst [vmem:[%s881_s30 + $0xf8] sm:$0xff] %v559_v50  ;;  %573 = vst [vmem:[%s881_s30 + $0x68] sm:$0xff] %v541_v51 }
 0x106   : > { %589 = vst [vmem:[%s881_s30 + $0xe8] sm:$0xff] %v557_v52 }
 0x107 PF: > { %s13_s12 = sadd.s32 1, %s791_s12  }
 0x108   : > { %p10_p4 = scmp.ge.s32.totalorder %s13_s12, 4  }
 0x10a   :  { %12 = sbr.rel (!%p10_p4) target bundleno = 1 (0x1), region = 62 }

</bundles_post_ra>
